<compile_context>
chip_gen: v5e
topology: v5e:2x2
jax: 0.10.0
libtpu: 0.0.40
codegen_flags: <defaults>
</compile_context>

<pallas_src>
import jax
import jax.numpy as jnp
from jax.experimental import pallas as pl
from jax.experimental.pallas import tpu as pltpu

BN_EPS = 1e-5
# MXU operand dtype (accumulation is always f32).  bf16 ~2x MXU throughput and
# half the input DMA bytes on v6e/v7x; use jnp.float32 for exact-f32 semantics.
COMPUTE_DTYPE = jnp.bfloat16


def _conv_stats_kernel(x_ref, w_ref, y_ref, stats_ref):
    # x_ref    : (nb, H, W*Cin)        nb whole images, channels on lanes
    # w_ref    : (3*W*Cin, W*cout_p)   banded conv weight, all 3 kernel rows in K
    # y_ref    : (nb, H, W*cout_p)     f32 conv output (pre-BN), lane-dense
    # stats_ref: (1, 8, W*cout_p)      row 0 = partial sum, row 1 = partial sumsq
    nb, H, WC = x_ref.shape
    M = nb * H
    WCo = y_ref.shape[-1]

    # Flatten images to rows (layout-free leading-dim merge); build the +-1 row
    # shifts with XLU sublane rolls instead of misaligned halo-scratch slices.
    x = x_ref[...].reshape(M, WC)
    xf = x.astype(jnp.float32)                   # 32-bit sublane-rotate path
    up = pltpu.roll(xf, shift=1, axis=0)         # row m <- x[m-1]   (ky = 0 tap)
    dn = pltpu.roll(xf, shift=M - 1, axis=0)     # row m <- x[m+1]   (ky = 2 tap)

    # Zero the rows that wrapped across an image boundary (the H zero-halo).
    rid = jax.lax.broadcasted_iota(jnp.int32, (M, 1), 0)
    first = rid == 0
    last = rid == H - 1
    for b in range(1, nb):                       # static, nb is small
        first = jnp.logical_or(first, rid == b * H)
        last = jnp.logical_or(last, rid == b * H + H - 1)
    up = jnp.where(first, 0.0, up)
    dn = jnp.where(last, 0.0, dn)

    # Lane-concat of 128-lane chunks is layout-free -> one K = 3*W*Cin matmul.
    patch = jnp.concatenate([up, xf, dn], axis=-1).astype(w_ref.dtype)
    y = jnp.dot(patch, w_ref[...], preferred_element_type=jnp.float32)  # (M, WCo)
    y_ref[...] = y.reshape(nb, H, WCo)
    # NOTE: conv bias intentionally omitted — BN mean-centering cancels it.

    # Partial BN statistics: sublane (XLU) reduces, overlap the MXU pushes.
    s1 = jnp.sum(y, axis=0, keepdims=True)
    s2 = jnp.sum(y * y, axis=0, keepdims=True)
    stats_ref[...] = jnp.concatenate(
        [s1, s2, jnp.zeros((6, WCo), jnp.float32)], axis=0).reshape(1, 8, WCo)


def _bn_relu_kernel(y_ref, scale_ref, shift_ref, o_ref):
    # y_ref: (nb, H, WCo) f32; scale/shift: (1, WCo); o_ref: (nb, H, WCo) f32
    o_ref[...] = jnp.maximum(y_ref[...] * scale_ref[...] + shift_ref[...], 0.0)


def _round_up(x, m):
    return (x + m - 1) // m * m


def _pick_block_n(N, H):
    """Images per grid block: aim for M = block_n*H >= ~256 rows of MXU work
    while keeping >= 2 grid steps (megacore / pipelining) when N allows."""
    bn = 1
    for cand in range(1, N + 1):
        if N % cand == 0 and cand * H <= 256 and N // cand >= 2:
            bn = cand
    return bn


def _build_banded_weight(w_oihw, W, cout_p, dtype):
    """(Cout,Cin,3,3) conv weight -> (3*W*Cin, W*cout_p) banded matmul weight.

    Wbig[ky*W*Cin + wi*Cin + ci, wo*cout_p + co] = w[co, ci, ky, wi - wo + 1]
    (zero outside the band), so a single matmul implements the whole W axis of
    the convolution including its zero "same" padding at the left/right border.
    """
    Cout, Cin, KH, KW = w_oihw.shape
    w_hwio = jnp.transpose(w_oihw, (2, 3, 1, 0)).astype(jnp.float32)  # (KH,KW,Cin,Cout)
    w_hwio = jnp.pad(w_hwio, ((0, 0), (0, 0), (0, 0), (0, cout_p - Cout)))
    wi = jnp.arange(W)
    wo = jnp.arange(W)
    kx = jnp.arange(KW)
    band = ((wi[None, None, :] - wo[None, :, None] + KW // 2)
            == kx[:, None, None]).astype(jnp.float32)                 # (KW, W, W)
    wbig = jnp.einsum('xoi,kxcd->kicod', band, w_hwio)                 # (KH,W,Cin,W,cout_p)
    return wbig.reshape(KH * W * Cin, W * cout_p).astype(dtype)


def squeeze_block_forward(x_nchw, w_oihw, bias, gamma, beta):
    """Mirrors squeeze_block(in_ch, out_ch).forward(x) in training mode (NCHW in/out).

    `bias` is accepted for interface parity with nn.Conv2d but unused: a conv
    bias followed by BatchNorm is exactly cancelled by the BN mean-centering.
    """
    del bias
    N, Cin, H, W = x_nchw.shape
    Cout, _, KH, _ = w_oihw.shape
    # Pad Cout so the output lane axis (W * cout_p) is dense (W=16, Cout=4 ->
    # cout_p=8 -> 128 lanes, unmasked vst).  Padded channels carry zero
    # weights/gamma/beta and are sliced off below.
    cout_p = _round_up(Cout, 8)
    WC = W * Cin
    WCo = W * cout_p

    block_n = _pick_block_n(N, H)
    n_blocks = N // block_n

    # Wrapper-side layout plumbing (single pass over x / weight-sized work).
    x_rows = jnp.transpose(x_nchw, (0, 2, 3, 1)).reshape(N, H, WC).astype(COMPUTE_DTYPE)
    wbig = _build_banded_weight(w_oihw, W, cout_p, COMPUTE_DTYPE)

    # Pass 1: conv (one K=3*W*Cin MXU matmul per block) + partial BN sums.
    y, stats = pl.pallas_call(
        _conv_stats_kernel,
        grid=(n_blocks,),
        in_specs=[
            pl.BlockSpec((block_n, H, WC), lambda i: (i, 0, 0)),
            pl.BlockSpec((3 * WC, WCo), lambda i: (0, 0)),   # VMEM-resident weight
        ],
        out_specs=[
            pl.BlockSpec((block_n, H, WCo), lambda i: (i, 0, 0)),
            pl.BlockSpec((1, 8, WCo), lambda i: (i, 0, 0)),
        ],
        out_shape=[
            jax.ShapeDtypeStruct((N, H, WCo), jnp.float32),
            jax.ShapeDtypeStruct((n_blocks, 8, WCo), jnp.float32),
        ],
        compiler_params=pltpu.CompilerParams(dimension_semantics=("parallel",)),
    )(x_rows, wbig)

    # Finalize BatchNorm statistics on tiny (cout_p,)-sized vectors (wrapper).
    s1 = stats[:, 0, :].sum(axis=0).reshape(W, cout_p).sum(axis=0)
    s2 = stats[:, 1, :].sum(axis=0).reshape(W, cout_p).sum(axis=0)
    count = float(N * H * W)
    mean = s1 / count
    var = s2 / count - mean * mean              # biased variance (training-mode BN)
    gamma_p = jnp.pad(gamma.astype(jnp.float32), (0, cout_p - Cout))
    beta_p = jnp.pad(beta.astype(jnp.float32), (0, cout_p - Cout))
    scale = gamma_p * jax.lax.rsqrt(var + BN_EPS)
    shift = beta_p - mean * scale
    scale_row = jnp.tile(scale, W)[None, :]     # lane = w*cout_p + c
    shift_row = jnp.tile(shift, W)[None, :]

    # Pass 2: folded BN affine + ReLU, lane-dense 128-lane stores.
    out_rows = pl.pallas_call(
        _bn_relu_kernel,
        grid=(n_blocks,),
        in_specs=[
            pl.BlockSpec((block_n, H, WCo), lambda i: (i, 0, 0)),
            pl.BlockSpec((1, WCo), lambda i: (0, 0)),
            pl.BlockSpec((1, WCo), lambda i: (0, 0)),
        ],
        out_specs=pl.BlockSpec((block_n, H, WCo), lambda i: (i, 0, 0)),
        out_shape=jax.ShapeDtypeStruct((N, H, WCo), jnp.float32),
        compiler_params=pltpu.CompilerParams(dimension_semantics=("parallel",)),
    )(y, scale_row, shift_row)

    out = out_rows.reshape(N, H, W, cout_p)[..., :Cout]
    return jnp.transpose(out, (0, 3, 1, 2))     # back to NCHW


def _reference(x_nchw, w_oihw, bias, gamma, beta):
    """Pure-JAX f32 reference (lax conv + training-mode BN + ReLU), NCHW."""
    y = jax.lax.conv_general_dilated(
        x_nchw.astype(jnp.float32), w_oihw.astype(jnp.float32),
        window_strides=(1, 1), padding=((1, 1), (1, 1)),
        dimension_numbers=("NCHW", "OIHW", "NCHW"))
    y = y + bias[None, :, None, None]
    mean = jnp.mean(y, axis=(0, 2, 3), keepdims=True)
    var = jnp.mean((y - mean) ** 2, axis=(0, 2, 3), keepdims=True)
    y = (y - mean) * jax.lax.rsqrt(var + BN_EPS)
    y = y * gamma[None, :, None, None] + beta[None, :, None, None]
    return jnp.maximum(y, 0.0)


if __name__ == "__main__":
    # Small shapes consistent with the module ("reduce number of channels").
    N, Cin, Cout, H, W = 2, 8, 4, 16, 16

    key = jax.random.PRNGKey(0)
    kx, kw, kb, kg, kbe = jax.random.split(key, 5)

    x = jax.random.normal(kx, (N, Cin, H, W), dtype=jnp.float32)

    # PyTorch Conv2d default init: U(-1/sqrt(fan_in), +1/sqrt(fan_in)).
    fan_in = Cin * 3 * 3
    bound = 1.0 / (fan_in ** 0.5)
    w_oihw = jax.random.uniform(kw, (Cout, Cin, 3, 3),
                                minval=-bound, maxval=bound, dtype=jnp.float32)
    bias = jax.random.uniform(kb, (Cout,),
                              minval=-bound, maxval=bound, dtype=jnp.float32)
    # Non-default BN affine params to exercise the gamma/beta path.
    gamma = jax.random.uniform(kg, (Cout,), minval=0.5, maxval=1.5, dtype=jnp.float32)
    beta = 0.1 * jax.random.normal(kbe, (Cout,), dtype=jnp.float32)

    out = squeeze_block_forward(x, w_oihw, bias, gamma, beta)
    out = jax.block_until_ready(out)

    ref = jax.block_until_ready(_reference(x, w_oihw, bias, gamma, beta))
    assert out.shape == (N, Cout, H, W)
    # bf16 MXU operands (f32 accumulation) round the conv inputs; the f32 path
    # matches to 1e-4.
    tol = 1e-4 if COMPUTE_DTYPE == jnp.float32 else 3e-2
    assert jnp.allclose(out, ref, atol=tol, rtol=tol), (
        float(jnp.max(jnp.abs(out - ref))))

    print("KERNEL_OK")
</pallas_src>

<mosaic_0001>
module attributes {stable_mosaic.version = 11 : i64} {
  func.func @_conv_stats_kernel(%arg0: i32, %arg1: memref<1x16x128xbf16, #tpu.memory_space<vmem>>, %arg2: memref<384x128xbf16, #tpu.memory_space<vmem>>, %arg3: memref<1x16x128xf32, #tpu.memory_space<vmem>>, %arg4: memref<1x8x128xf32, #tpu.memory_space<vmem>>) attributes {dimension_semantics = [#tpu.dimension_semantics<parallel>], iteration_bounds = array<i64: 2>, scalar_prefetch = 0 : i64, scratch_operands = 0 : i64, tpu.core_type = #tpu.core_type<tc>, window_params = [{transform_indices = @transform_0, window_bounds = array<i64: 1, 16, 128>}, {pipeline_mode = #tpu.pipeline_mode<synchronous>, transform_indices = @transform_1, window_bounds = array<i64: 384, 128>}, {transform_indices = @transform_2, window_bounds = array<i64: 1, 16, 128>}, {transform_indices = @transform_3, window_bounds = array<i64: 1, 8, 128>}]} {
    %c0 = arith.constant 0 : index
    %c0_0 = arith.constant 0 : index
    %c0_1 = arith.constant 0 : index
    %0 = vector.load %arg1[%c0, %c0_0, %c0_1] : memref<1x16x128xbf16, #tpu.memory_space<vmem>>, vector<1x16x128xbf16>
    %1 = vector.shape_cast %0 : vector<1x16x128xbf16> to vector<16x128xbf16>
    %2 = arith.extf %1 : vector<16x128xbf16> to vector<16x128xf32>
    %c1_i32 = arith.constant 1 : i32
    %3 = tpu.dynamic_rotate %2 by %c1_i32 dim 0 : vector<16x128xf32>, i32 -> vector<16x128xf32>
    %c15_i32 = arith.constant 15 : i32
    %4 = tpu.dynamic_rotate %2 by %c15_i32 dim 0 : vector<16x128xf32>, i32 -> vector<16x128xf32>
    %5 = tpu.iota {dimensions = array<i32: 0>} : vector<16x1xi32>
    %c0_i32 = arith.constant 0 : i32
    %6 = vector.broadcast %c0_i32 : i32 to vector<16x1xi32>
    %7 = arith.cmpi eq, %5, %6 : vector<16x1xi32>
    %c15_i32_2 = arith.constant 15 : i32
    %8 = vector.broadcast %c15_i32_2 : i32 to vector<16x1xi32>
    %9 = arith.cmpi eq, %5, %8 : vector<16x1xi32>
    %cst = arith.constant 0.000000e+00 : f32
    %10 = vector.shape_cast %7 : vector<16x1xi1> to vector<16x1xi1>
    %11 = vector.broadcast %10 : vector<16x1xi1> to vector<16x128xi1>
    %12 = vector.broadcast %cst : f32 to vector<16x128xf32>
    %13 = arith.select %11, %12, %3 : vector<16x128xi1>, vector<16x128xf32>
    %cst_3 = arith.constant 0.000000e+00 : f32
    %14 = vector.shape_cast %9 : vector<16x1xi1> to vector<16x1xi1>
    %15 = vector.broadcast %14 : vector<16x1xi1> to vector<16x128xi1>
    %16 = vector.broadcast %cst_3 : f32 to vector<16x128xf32>
    %17 = arith.select %15, %16, %4 : vector<16x128xi1>, vector<16x128xf32>
    %18 = tpu.concatenate %13, %2, %17 in 1 : vector<16x128xf32>, vector<16x128xf32>, vector<16x128xf32> -> vector<16x384xf32>
    %19 = arith.truncf %18 : vector<16x384xf32> to vector<16x384xbf16>
    %c0_4 = arith.constant 0 : index
    %c0_5 = arith.constant 0 : index
    %20 = vector.load %arg2[%c0_4, %c0_5] : memref<384x128xbf16, #tpu.memory_space<vmem>>, vector<384x128xbf16>
    %cst_6 = arith.constant dense<0.000000e+00> : vector<16x128xf32>
    %21 = tpu.matmul %19, %20, %cst_6 {dimension_numbers = #tpu.dot_dimension_numbers<[1], [0], [0], [1], [0, 0, 1, 1], [], []>} : vector<16x384xbf16>, vector<384x128xbf16>, vector<16x128xf32> -> vector<16x128xf32>
    %22 = vector.shape_cast %21 : vector<16x128xf32> to vector<1x16x128xf32>
    %c0_7 = arith.constant 0 : index
    %c0_8 = arith.constant 0 : index
    %c0_9 = arith.constant 0 : index
    %23 = vector.load %arg3[%c0_7, %c0_8, %c0_9] : memref<1x16x128xf32, #tpu.memory_space<vmem>>, vector<1x16x128xf32>
    tpu.vector_store %arg3[%c0_7, %c0_8, %c0_9], %22 {strides = array<i32>} : memref<1x16x128xf32, #tpu.memory_space<vmem>>, vector<1x16x128xf32>,
    %cst_10 = arith.constant dense<0.000000e+00> : vector<128xf32>
    %24 = vector.multi_reduction <add>, %21, %cst_10 [0] : vector<16x128xf32> to vector<128xf32>
    %25 = vector.shape_cast %24 : vector<128xf32> to vector<1x128xf32>
    %26 = arith.mulf %21, %21 : vector<16x128xf32>
    %cst_11 = arith.constant dense<0.000000e+00> : vector<128xf32>
    %27 = vector.multi_reduction <add>, %26, %cst_11 [0] : vector<16x128xf32> to vector<128xf32>
    %28 = vector.shape_cast %27 : vector<128xf32> to vector<1x128xf32>
    %cst_12 = arith.constant 0.000000e+00 : f32
    %29 = vector.broadcast %cst_12 : f32 to vector<6x128xf32>
    %30 = tpu.concatenate %25, %28, %29 in 0 : vector<1x128xf32>, vector<1x128xf32>, vector<6x128xf32> -> vector<8x128xf32>
    %31 = vector.shape_cast %30 : vector<8x128xf32> to vector<1x8x128xf32>
    %c0_13 = arith.constant 0 : index
    %c0_14 = arith.constant 0 : index
    %c0_15 = arith.constant 0 : index
    %32 = vector.load %arg4[%c0_13, %c0_14, %c0_15] : memref<1x8x128xf32, #tpu.memory_space<vmem>>, vector<1x8x128xf32>
    tpu.vector_store %arg4[%c0_13, %c0_14, %c0_15], %31 {strides = array<i32>} : memref<1x8x128xf32, #tpu.memory_space<vmem>>, vector<1x8x128xf32>,
    return
  }
  func.func @transform_0(%arg0: i32) -> (i32, i32, i32) {
    %c0_i32 = arith.constant 0 : i32
    %c0_i32_0 = arith.constant 0 : i32
    %c0_i32_1 = arith.constant 0 : i32
    return %arg0, %c0_i32, %c0_i32_0 : i32, i32, i32
  }
  func.func @transform_1(%arg0: i32) -> (i32, i32) {
    %c0_i32 = arith.constant 0 : i32
    %c0_i32_0 = arith.constant 0 : i32
    %c0_i32_1 = arith.constant 0 : i32
    return %c0_i32, %c0_i32_0 : i32, i32
  }
  func.func @transform_2(%arg0: i32) -> (i32, i32, i32) {
    %c0_i32 = arith.constant 0 : i32
    %c0_i32_0 = arith.constant 0 : i32
    %c0_i32_1 = arith.constant 0 : i32
    return %arg0, %c0_i32, %c0_i32_0 : i32, i32, i32
  }
  func.func @transform_3(%arg0: i32) -> (i32, i32, i32) {
    %c0_i32 = arith.constant 0 : i32
    %c0_i32_0 = arith.constant 0 : i32
    %c0_i32_1 = arith.constant 0 : i32
    return %arg0, %c0_i32, %c0_i32_0 : i32, i32, i32
  }
}

</mosaic_0001>

<bundles_post_ra>
// kernel: tpu_custom_call.1
= control target key start
LH: loop header
LB: loop body
LE: loop exit
PB: predicated region body
PF: predicated region fallthrough
CT: control target
= control target key end

     0   :  { %9 = vsyncpa [#allocation3], 0  ;;  %s1242_s0 = inlined_call_operand.hbm [shape: bf16[2,16,128], index: 0, kind: input, shape index: {}]   ;;  %s1243_s1 = inlined_call_operand.hbm [shape: bf16[384,128], index: 1, kind: input, shape index: {}]   ;;  %s1244_s2 = inlined_call_operand.hbm [shape: f32[2,16,128], index: 2, kind: output, shape index: {0}]   ;;  %s1245_s3 = inlined_call_operand.hbm [shape: f32[2,8,128], index: 3, kind: output, shape index: {1}]  }
   0x1   :  { %11 = vsyncpa [#allocation3 + $0x1], 0 }
   0x2   :  { %12 = vsyncpa [#allocation6], 0 }
   0x3   :  { %13 = vsyncpa [#allocation4], 0 }
   0x4   :  { %15 = vsyncpa [#allocation4 + $0x1], 0 }
   0x5   :  { %16 = vsyncpa [#allocation9], 0 }
   0x6   :  { %18 = vsyncpa [#allocation9 + $0x1], 0  ;;  %s1075_s12 = smov 0   ;;  %s1077_s13 = smov 0  }
   0x7   :  { %s1079_s14 = smov 0   ;;  %s1081_s15 = smov 0  }
   0x8 LB: > { %s1096_s16 = sadd.s32 4294967295, %s1047_s15   ;;  %s663_s17 = sadd.s32 4294967294, %s1047_s15   ;;  %s1047_s15 = sphi %s1081_s15, %s1255_s15   ;;  %s1043_s14 = sphi %s1079_s14, %s1254_s14   ;;  %s1039_s13 = sphi %s1077_s13, %s1253_s13   ;;  %s1035_s12 = sphi %s1075_s12, %s1252_s12  }
   0x9   : > { %p44_p0 = scmp.ne.s32.totalorder %s1039_s13, %s1035_s12  ;;  %p45_p1 = scmp.eq.s32.totalorder %s1096_s16, 0 }
   0xa   : > { %p89_p2 = scmp.eq.s32.totalorder %s1096_s16, 1  ;;  %p95_p3 = scmp.eq.s32.totalorder %s663_s17, 1 }
   0xb   : > { %p1105_p4 = por %p45_p1, %p44_p0  ;;  %p664_p5 = scmp.ge.s32.totalorder %s1047_s15, 1 }
   0xc   : > { %p1110_p6 = por %p95_p3, %p44_p0  ;;  %p128_p7 = scmp.lt.s32.totalorder %s1047_s15, 3 }
   0xd   : > { %s139_s22 = sshll.u32 %s1243_s1, 4  ;;  %s1049_s24 = smov [#allocation5]   ;;  %s140_s22 = int_to_ptr.hbm [resolvable:$true] %s139_s22 }
   0xe   : > { %p1118_p8 = pnand %p664_p5, %p128_p7  ;;  %s141_s25 = sshll.u32 %s1049_s24, 4  ;;  %s142_s25 = int_to_ptr.vmem [resolvable:$true] %s141_s25 }
   0xf   : > { %s1128_s26 = sadd.s32 1, %s1047_s15   ;;  %s1050_s27 = smov 64  }
  0x10   : > { %p828_p9 = pneg %p1118_p8  ;;  %s1051_s28 = smov 4  }
  0x11   : > { %s28_s29 = ssub.s32 %s1047_s15, %s1128_s26  ;;  %s31_s30 = sadd.s32 1, %s1043_s14 }
  0x12   : > { %p829_p10 = pnand %p828_p9, %p45_p1  ;;  %p29_p12 = scmp.eq.s32.totalorder %s28_s29, 0 }
  0x13   : > { %p38_p13 = scmp.ne.s32.totalorder %s1043_s14, %s1039_s13  ;;  %p39_p0 = scmp.eq.s32.totalorder %s1047_s15, 0 }
  0x14   : > { %831 = dma.hbm_to_vmem [thread:$0]  (!%p829_p10), %s140_s22, 3072, %s142_s25, [#allocation6], %s1050_s27, %s1050_s27, %s1051_s28  }
  0x15   : > { %s1140_s4 = scalar_select %p29_p12, %s1043_s14, %s31_s30  }
  0x16   : > { %p1144_p3 = por %p89_p2, %p38_p13  ;;  %p844_p5 = scmp.lt.s32.totalorder %s1047_s15, 2 }
  0x17   : > { %s155_s6 = sand.u32 1, %s1043_s14   ;;  %s786_s7 = sshll.u32 %s1047_s15, 3 }
  0x18   : > { %p40_p7 = por %p39_p0, %p38_p13  ;;  %s667_s8 = sshll.u32 %s155_s6, 3 }
  0x19   : > { %s164_s11 = scalar_lea.hbm %s1242_s0, %s786_s7  ;;  %s159_s20 = scalar_lea.vmem [#allocation2], %s667_s8 }
  0x1a   : > { %s165_s17 = sshll.u32 %s164_s11, 4  ;;  %s167_s21 = sshll.u32 %s159_s20, 4  ;;  %s166_s17 = int_to_ptr.hbm [resolvable:$true] %s165_s17  ;;  %s168_s21 = int_to_ptr.vmem [resolvable:$true] %s167_s21 }
  0x1b   : > { %p1154_p9 = pnand %p844_p5, %p40_p7  ;;  %s156_s24 = scalar_lea.sflag [#allocation3], %s155_s6 }
  0x1c   : > { %s915_s25 = sshra.s32 %s166_s17, 4  ;;  %s922_s8 = scalar_lea.hbm %s1242_s0, 16  ;;  %s916_s25 = int_to_ptr.hbm [resolvable:$true] %s915_s25 }
  0x1d   : > { %s917_s29 = scalar_lea.hbm %s916_s25, 8  ;;  %p919_p10 = pneg %p1154_p9 }
  0x1e   : > { %p918_p2 = scmp.ne.s32.totalorder %s916_s25, %s917_s29  ;;  %p923_p0 = scmp.lt.s32.totalorder %s916_s25, %s1242_s0 }
  0x1f   : > { %p924_p5 = scmp.lt.s32.totalorder %s922_s8, %s917_s29 }
  0x20   : > { %p920_p12 = pnand %p919_p10, %p918_p2 }
  0x21   : > { %p925_p7 = por %p924_p5, %p923_p0 }
  0x22   : > { %p921_p13 = pneg %p920_p12 }
  0x24   : > { %p926_p11 = pnand %p925_p7, %p921_p13 }
  0x26   : > { %929 = shalt.err (!%p926_p11)
}
  0x27   : > { %835 = dma.hbm_to_vmem [thread:$0]  (!%p1154_p9), %s166_s17, 128, %s168_s21, %s156_s24, %s1050_s27, %s1050_s27, %s1051_s28  }
  0x28   : > { %179 = sbr.rel (%p1118_p8) target bundleno = 245 (0xf5), region = 28  ;;  %s1174_s6 = sand.u32 (!%p1118_p8), 1, %s1039_s13  }
  0x29   : > { %s671_s11 = sshll.u32 (!%p1118_p8), %s1174_s6, 3  ;;  %s182_s20 = scalar_lea.sflag (!%p1118_p8), [#allocation3], %s1174_s6 }
  0x2a   : > { %s1180_s25 = scalar_lea.vmem (!%p1118_p8), [#allocation2], %s671_s11 }
  0x2d   : > { %1018 = dma.done.wait (%p1105_p4), %s182_s20, 128  }
  0x2e   : > { %1020 = vsyncadd (%p1105_p4), %s182_s20, 4294967168 }
  0x2f   : > { %1022 = dma.done.wait (%p45_p1), [#allocation6], 3072  }
  0x30   : > { %1024 = vsyncadd (%p45_p1), [#allocation6], 4294964224  ;;  %v794_v0 = vld [vmem:[#allocation5 + $0x38] sm:$0xff]  ;;  %v793_v3 = vld [vmem:[#allocation5 + $0x30] sm:$0xff]  ;;  %v225_v16 = vlaneseq  ;;  %vm1052_vm4 = vmmov 1   ;;  %s673_s18 = sshll.u32 %s1174_s6, 4 }
  0x31   : > { %v802_v1 = vld [vmem:[#allocation5 + $0x78] sm:$0xff]  ;;  %447 = vmatpush.bf16.msra.mxu0 %v794_v0  ;;  %v801_v4 = vld [vmem:[#allocation5 + $0x70] sm:$0xff]  ;;  %v792_v6 = vld [vmem:[#allocation5 + $0x28] sm:$0xff]  ;;  %s811_s23 = sshll.u32 %s1096_s16, 4  ;;  %s211_s27 = scalar_lea.vmem [#allocation7], %s673_s18 }
  0x32   : > { %v810_v2 = vld [vmem:[#allocation5 + $0xb8] sm:$0xff]  ;;  %461 = vmatpush.bf16.msra.mxu1 %v802_v1  ;;  %v809_v5 = vld [vmem:[#allocation5 + $0xb0] sm:$0xff]  ;;  %v800_v7 = vld [vmem:[#allocation5 + $0x68] sm:$0xff]  ;;  %v226_v22 = vshrl.u32 %v225_v16, 7  ;;  %s529_s21 = scalar_lea.hbm %s1244_s2, %s811_s23  ;;  %s530_s22 = sshll.u32 %s211_s27, 4  ;;  %s531_s22 = int_to_ptr.vmem [resolvable:$true] %s530_s22 }
  0x33   : > { %475 = vmatpush.bf16.msra.mxu2 %v810_v2  ;;  %v808_v8 = vld [vmem:[#allocation5 + $0xa8] sm:$0xff]  ;;  %v791_v9 = vld [vmem:[#allocation5 + $0x20] sm:$0xff]  ;;  %v790_v12 = vld [vmem:[#allocation5 + $0x18] sm:$0xff]  ;;  %s532_s24 = sshll.u32 %s529_s21, 4  ;;  %s513_s29 = scalar_lea.sflag [#allocation4], %s1174_s6  ;;  %s533_s24 = int_to_ptr.hbm [resolvable:$true] %s532_s24 }
  0x34   : > { %v799_v10 = vld [vmem:[#allocation5 + $0x60] sm:$0xff]  ;;  %v798_v13 = vld [vmem:[#allocation5 + $0x58] sm:$0xff]  ;;  %v789_v17 = vld [vmem:[#allocation5 + $0x10] sm:$0xff]  ;;  %vm227_vm0 = vcmp.lt.s32.totalorder %v226_v22, 1  ;;  %vm232_vm1 = vcmp.lt.s32.totalorder %v226_v22, 7  ;;  %v235_v30 = vadd.s32 8, %v226_v22 }
  0x35   : > { %448 = vmatpush.bf16.msra.mxu0 %v793_v3  ;;  %v807_v11 = vld [vmem:[#allocation5 + $0xa0] sm:$0xff]  ;;  %v806_v14 = vld [vmem:[#allocation5 + $0x98] sm:$0xff]  ;;  %v797_v18 = vld [vmem:[#allocation5 + $0x50] sm:$0xff]  ;;  %vm816_vm2 = vcmp.ne.s32.totalorder %v226_v22, 0  ;;  %s959_s30 = sshra.s32 %s533_s24, 4  ;;  %s965_s10 = scalar_lea.hbm %s1244_s2, 32  ;;  %s960_s30 = int_to_ptr.hbm [resolvable:$true] %s959_s30 }
  0x36   : > { %462 = vmatpush.bf16.msra.mxu1 %v801_v4  ;;  %v813_v15 = vld [vmem:[%s1180_s25] sm:$0xff]   ;;  %v788_v23 = vld [vmem:[#allocation5 + $0x8] sm:$0xff]  ;;  %v787_v31 = vld [vmem:[#allocation5] sm:$0xff]  ;;  %vm817_vm3 = vcmp.ne.s32.totalorder %v235_v30, 15  ;;  %s961_s7 = scalar_lea.hbm %s960_s30, 16  ;;  %p966_p11 = scmp.lt.s32.totalorder %s960_s30, %s1244_s2 }
  0x37   : > { %476 = vmatpush.bf16.msra.mxu2 %v809_v5  ;;  %v814_v19 = vunpack.c.l.bf16 %v813_v15  ;;  %v815_v20 = vunpack.c.h.bf16 %v813_v15  ;;  %v805_v21 = vld [vmem:[#allocation5 + $0x90] sm:$0xff]  ;;  %v796_v24 = vld [vmem:[#allocation5 + $0x48] sm:$0xff]  ;;  %v795_v32 = vld [vmem:[#allocation5 + $0x40] sm:$0xff]  ;;  %p962_p1 = scmp.ne.s32.totalorder %s960_s30, %s961_s7  ;;  %p967_p9 = scmp.lt.s32.totalorder %s965_s10, %s961_s7 }
  0x38   : > { %v804_v27 = vld [vmem:[#allocation5 + $0x88] sm:$0xff]  ;;  %v803_v35 = vld [vmem:[#allocation5 + $0x80] sm:$0xff]  ;;  %vm772_vm5 = vmpackc.low %vm1052_vm4, %vm816_vm2 }
  0x39   : > { %449 = vmatpush.bf16.msra.mxu0 %v792_v6  ;;  %v223_v25 = vrot.slane %v814_v19, 7  ;;  %v224_v26 = vrot.slane %v815_v20, 7  ;;  %v230_v28 = vrot.slane %v814_v19, 1  ;;  %v231_v29 = vrot.slane %v815_v20, 1  ;;  %vm776_vm6 = vmpackc.low %vm817_vm3, %vm1052_vm4  ;;  %p963_p4 = pnand %p962_p1, %p1144_p3  ;;  %p968_p2 = por %p967_p9, %p966_p11 }
  0x3a   : > { %463 = vmatpush.bf16.msra.mxu1 %v800_v7 }
  0x3b   : > { %477 = vmatpush.bf16.msra.mxu2 %v808_v8  ;;  %v228_v33 = vsel %vm227_vm0, %v223_v25, %v224_v26  ;;  %v229_v34 = vsel %vm227_vm0, %v224_v26, %v223_v25  ;;  %v233_v36 = vsel %vm232_vm1, %v230_v28, %v231_v29  ;;  %v234_v37 = vsel %vm232_vm1, %v231_v29, %v230_v28  ;;  %p964_p8 = pneg %p963_p4 }
  0x3c   : > { %v773_v38 = vpack.c.bf16 %v228_v33, %v229_v34  ;;  %v777_v39 = vpack.c.bf16 %v234_v37, %v233_v36 }
  0x3d   : > { %450 = vmatpush.bf16.msra.mxu0 %v791_v9  ;;  %p969_p10 = pnand %p968_p2, %p964_p8 }
  0x3e   : > { %464 = vmatpush.bf16.msra.mxu1 %v799_v10 }
  0x3f   : > { %478 = vmatpush.bf16.msra.mxu2 %v807_v11 }
  0x41   : > { %451 = vmatpush.bf16.msra.mxu0 %v790_v12 }
  0x42   : > { %465 = vmatpush.bf16.msra.mxu1 %v798_v13 }
  0x43   : > { %479 = vmatpush.bf16.msra.mxu2 %v806_v14 }
  0x45   : > { %452 = vmatpush.bf16.msra.mxu0 %v789_v17 }
  0x46   : > { %466 = vmatpush.bf16.msra.mxu1 %v797_v18 }
  0x47   : > { %480 = vmatpush.bf16.msra.mxu2 %v805_v21 }
  0x49   : > { %453 = vmatpush.bf16.msra.mxu0 %v788_v23 }
  0x4a   : > { %467 = vmatpush.bf16.msra.mxu1 %v796_v24 }
  0x4b   : > { %481 = vmatpush.bf16.msra.mxu2 %v804_v27 }
  0x4d   : > { %454 = vmatpush.bf16.msra.mxu0 %v787_v31 }
  0x4e   : > { %468 = vmatpush.bf16.msra.mxu1 %v795_v32 }
  0x4f   : > { %482 = vmatpush.bf16.msra.mxu2 %v803_v35 }
  0x50   : > { %774 = vmatmul.msk.bf16.vlgmr.msra.gmra.mxu0 %vm772_vm5, %v773_v38 }
  0x51   : > { %469 = vmatmul.bf16.vlgmr.msra.gmra.mxu1 %v813_v15 }
  0x52   : > { %778 = vmatmul.msk.bf16.vlgmr.msra.gmra.mxu2 %vm776_vm6, %v777_v39 }
  0xcd   : > { %v456_v40 = vpop.f32.mrf.mxu0 }
  0xce   : > { %v470_v41 = vpop.f32.mrf.mxu1 }
  0xcf   : > { %v471_v42 = vadd.f32 %v470_v41, %v456_v40 }
  0xd5   : > { %v484_v43 = vpop.f32.mrf.mxu2  ;;  %v458_v45 = vpop.f32.mrf.mxu0 }
  0xd6   : > { %v485_v44 = vadd.f32 %v484_v43, %v471_v42  ;;  %v472_v46 = vpop.f32.mrf.mxu1 }
  0xd7   : > { %v473_v47 = vadd.f32 %v472_v46, %v458_v45 }
  0xd8   : > { %489 = vst [vmem:[%s211_s27] sm:$0xff] %v485_v44  ;;  %v498_v50 = vmul.f32 %v485_v44, %v485_v44 }
  0xdd   : > { %v486_v48 = vpop.f32.mrf.mxu2 }
  0xde   : > { %v487_v49 = vadd.f32 %v486_v48, %v473_v47 }
  0xe0   : > { %490 = vst [vmem:[%s211_s27 + $0x8] sm:$0xff] %v487_v49  ;;  %v491_v51 = vadd.f32 %v487_v49, %v485_v44  ;;  %v499_v52 = vmul.f32 %v487_v49, %v487_v49 }
  0xe1   : > { %972 = shalt.err (!%p969_p10)
}
  0xe2   : > { %s1053_s18 = smov 128   ;;  %s1054_s23 = smov 8   ;;  %v492_v53 = vrot.slane %v491_v51, 4  ;;  %v500_v54 = vadd.f32 %v499_v52, %v498_v50  ;;  %vm507_vm7 = vcmask 1040384   ;;  %vm509_vm8 = vcmask 1041408  }
  0xe3   : > { %824 = dma.vmem_to_hbm [thread:$0]  (%p1144_p3), %s531_s22, 256, %s533_s24, %s513_s29, %s1053_s18, %s1053_s18, %s1054_s23  }
  0xe4   : > { %v493_v55 = vadd.f32 %v492_v53, %v491_v51  ;;  %v501_v56 = vrot.slane %v500_v54, 4  ;;  %s783_s27 = sshll.u32 %s1096_s16, 3  ;;  %s218_s22 = scalar_lea.vmem [#allocation8], %s671_s11 }
  0xe5   : > { %s545_s21 = scalar_lea.hbm %s1245_s3, %s783_s27  ;;  %s547_s24 = sshll.u32 %s218_s22, 4  ;;  %s548_s24 = int_to_ptr.vmem [resolvable:$true] %s547_s24 }
  0xe6   : > { %v494_v57 = vrot.slane %v493_v55, 2  ;;  %v502_v58 = vadd.f32 %v501_v56, %v500_v54  ;;  %s549_s29 = sshll.u32 %s545_s21, 4  ;;  %s518_s16 = scalar_lea.sflag [#allocation9], %s1174_s6  ;;  %s550_s29 = int_to_ptr.hbm [resolvable:$true] %s549_s29 }
  0xe7   : > { %s987_s30 = sshra.s32 %s550_s29, 4  ;;  %s993_s9 = scalar_lea.hbm %s1245_s3, 16  ;;  %s988_s30 = int_to_ptr.hbm [resolvable:$true] %s987_s30 }
  0xe8   : > { %v495_v59 = vadd.f32 %v494_v57, %v493_v55  ;;  %v503_v60 = vrot.slane %v502_v58, 2  ;;  %s989_s7 = scalar_lea.hbm %s988_s30, 8  ;;  %p994_p5 = scmp.lt.s32.totalorder %s988_s30, %s1245_s3 }
  0xe9   : > { %p990_p12 = scmp.ne.s32.totalorder %s988_s30, %s989_s7  ;;  %p995_p7 = scmp.lt.s32.totalorder %s993_s9, %s989_s7 }
  0xea   : > { %v496_v61 = vrot.slane %v495_v59, 1  ;;  %v504_v62 = vadd.f32 %v503_v60, %v502_v58 }
  0xeb   : > { %p991_p13 = pnand %p990_p12, %p1144_p3  ;;  %p996_p1 = por %p995_p7, %p994_p5 }
  0xec   : > { %v505_v63 = vrot.slane %v504_v62, 1  ;;  %v497_v0 = vadd.f32 %v496_v61, %v495_v59 }
  0xed   : > { %p992_p0 = pneg %p991_p13 }
  0xee   : > { %v506_v1 = vadd.f32 %v505_v63, %v504_v62 }
  0xef   : > { %p997_p4 = pnand %p996_p1, %p992_p0 }
  0xf0   : > { %v508_v2 = vsel %vm507_vm7, %v497_v0, %v506_v1 }
  0xf1   : > { %v510_v3 = vsel %vm509_vm8, %v508_v2, 0.0 }
  0xf2   : > { %511 = vst [vmem:[%s218_s22] sm:$0xff] %v510_v3 }
  0xf3   : > { %1000 = shalt.err (!%p997_p4)
}
  0xf4   : > { %825 = dma.vmem_to_hbm [thread:$0]  (%p1144_p3), %s548_s24, 128, %s550_s29, %s518_s16  }
  0xf5 PF: > { %s561_s6 = sand.u32 1, %s1035_s12   ;;  %p1251_p8 = scmp.ge.s32.totalorder %s1047_s15, 2 }
  0xf6   : > { %s562_s25 = scalar_lea.sflag [#allocation4], %s561_s6 }
  0xf7   : > { %p837_p11 = pnand %p1251_p8, %p1110_p6 }
  0xf9   : > { %p838_p9 = pneg %p837_p11 }
  0xfb   : > { %1026 = dma.done.wait (%p838_p9), %s562_s25, 256  }
  0xfc   : > { %1028 = vsyncadd (%p838_p9), %s562_s25, 4294967040  ;;  %s572_s18 = scalar_lea.sflag [#allocation9], %s561_s6 }
  0xfd   : > { %1030 = dma.done.wait (%p838_p9), %s572_s18, 128  }
  0xfe   : > { %1032 = vsyncadd (%p838_p9), %s572_s18, 4294967168  ;;  %p21_p3 = scmp.ge.s32.totalorder %s1128_s26, 4   ;;  %s1252_s12 = smov %s1039_s13 }
  0xff   : > { %s1253_s13 = smov %s1043_s14  ;;  %s1254_s14 = smov %s1140_s4 }
 0x100   : > { %s1255_s15 = smov %s1128_s26  ;;  %23 = sbr.rel (!%p21_p3) target bundleno = 8 (0x8), region = 94 }
 0x105   :  { %578 = vsyncpa [#allocation3], 1 }
 0x106   :  { %580 = vsyncpa [#allocation3 + $0x1], 1 }
 0x107   :  { %581 = vsyncpa [#allocation6], 1 }
 0x108   :  { %582 = vsyncpa [#allocation4], 1 }
 0x109   :  { %584 = vsyncpa [#allocation4 + $0x1], 1 }
 0x10a   :  { %585 = vsyncpa [#allocation9], 1 }
 0x10b   :  { %587 = vsyncpa [#allocation9 + $0x1], 1 }

</bundles_post_ra>
